<compile_context>
chip_gen: v7x
topology: tpu7x:2x2x1
jax: 0.10.0
libtpu: 0.0.40
codegen_flags: <defaults>
</compile_context>

<pallas_src>
import math

import jax
import jax.numpy as jnp
from jax import lax
from jax.experimental import pallas as pl
from jax.experimental.pallas import tpu as pltpu

# ---- module config (ModulatedConv2d(in_channel=8, out_channel=8, kernel_size=3, style_dim=16)) ----
B = 2
C_IN = 8
C_OUT = 8
K = 3
STYLE_DIM = 16
H = W = 16
HW = H * W
KKC = K * K * C_IN                      # 72-deep contraction
PAD_FLAT = W + 1                        # lane padding so every tap offset is a valid static slice

LR_MUL = 1.0
MOD_SCALE = (1.0 / math.sqrt(STYLE_DIM)) * LR_MUL   # EqualLinear scale
CONV_SCALE = 1.0 / math.sqrt(C_IN * K * K)          # ModulatedConv2d scale
EPS = 1e-8
DEMODULATE = True


def modconv_kernel(x_ref, s_ref, w_ref, o_ref):
    """One grid step = one batch element.

    x_ref: (1, C_IN, HW + 2*PAD_FLAT) f32  flattened input, zero-padded along lanes
    s_ref: (1, 1, KKC) f32                 per-C_in modulation tiled over the K*K taps
    w_ref: (C_OUT, KKC) f32                CONV_SCALE-folded, batch-invariant conv weight
    o_ref: (1, C_OUT, HW)                  lane-dense output (256 lanes)
    """
    # ---- fold modulation + demodulation into the tiny weight (one vreg of VPU work) ----
    wb = w_ref[...] * s_ref[0]                                            # (C_OUT, KKC) f32
    if DEMODULATE:
        demod = lax.rsqrt(jnp.sum(wb * wb, axis=1, keepdims=True) + EPS)  # (C_OUT, 1)
        wb = wb * demod
    wb_bf = wb.astype(jnp.bfloat16)

    # ---- in-kernel im2col: 9 windowed loads at static lane offsets + column masks ----
    # Output-pixel column index, to mask the kx = +-1 taps that wrap across image rows.
    x_col = lax.broadcasted_iota(jnp.int32, (1, HW), 1) % W               # (1, HW)
    taps = []
    for dy in (-1, 0, 1):                                                 # ky = dy + 1
        for dx in (-1, 0, 1):                                             # kx = dx + 1
            start = PAD_FLAT + dy * W + dx                                # static, in [0, 2*PAD_FLAT]
            tap = x_ref[0, :, start:start + HW]                           # (C_IN, HW) windowed load
            if dx < 0:                                                    # valid iff x + dx >= 0
                tap = jnp.where(x_col >= -dx, tap, 0.0)
            elif dx > 0:                                                  # valid iff x + dx < W
                tap = jnp.where(x_col < W - dx, tap, 0.0)
            # dy out-of-range rows fall into the flat zero padding -> already 0.
            taps.append(tap)
    patches = jnp.concatenate(taps, axis=0).astype(jnp.bfloat16)          # (KKC, HW)

    # ---- single 72-deep bf16 MXU matmul, f32 accumulation, lane-dense output ----
    out = jnp.dot(wb_bf, patches, preferred_element_type=jnp.float32)     # (C_OUT, HW) f32
    o_ref[0] = out.astype(o_ref.dtype)


def modulated_conv2d(x_nchw, style, params):
    """x_nchw: (B, C_IN, H, W), style: (B, STYLE_DIM) -> (B, C_OUT, H, W)."""
    conv_w = params["conv_w"]           # (C_OUT, C_IN, K, K)
    mod_w = params["mod_w"]             # (C_IN, STYLE_DIM)
    mod_b = params["mod_b"]             # (C_IN,)

    # EqualLinear style projection: B*C_IN = 16 scalars (tiny, stays in XLA).
    s = style @ (mod_w * MOD_SCALE).T + mod_b * LR_MUL                    # (B, C_IN)
    s_tiled = jnp.tile(s, (1, K * K))[:, None, :]                         # (B, 1, KKC), tap-major

    # Batch-invariant scaled conv weight in tap-major (ky, kx, ci) order.
    wmat = (CONV_SCALE * jnp.transpose(conv_w, (2, 3, 1, 0))
            ).reshape(KKC, C_OUT).T                                       # (C_OUT, KKC)

    # Flatten spatial into the lane axis and zero-pad it; the kernel assembles the
    # im2col patch matrix from this (~18 KiB) instead of a (B, KKC, HW) HBM round trip.
    x_flat = x_nchw.reshape(B, C_IN, HW)
    x_pad = jnp.pad(x_flat, ((0, 0), (0, 0), (PAD_FLAT, PAD_FLAT)))       # (B, C_IN, HW + 2*PAD_FLAT)

    out_flat = pl.pallas_call(
        modconv_kernel,
        out_shape=jax.ShapeDtypeStruct((B, C_OUT, HW), jnp.float32),
        grid=(B,),                                                        # 1 batch elem / step (2 TCs on v7x)
        in_specs=[
            pl.BlockSpec((1, C_IN, HW + 2 * PAD_FLAT), lambda b: (b, 0, 0)),
            pl.BlockSpec((1, 1, KKC), lambda b: (b, 0, 0)),
            pl.BlockSpec((C_OUT, KKC), lambda b: (0, 0)),
        ],
        out_specs=pl.BlockSpec((1, C_OUT, HW), lambda b: (b, 0, 0)),
        compiler_params=pltpu.CompilerParams(dimension_semantics=("parallel",)),
    )(x_pad, s_tiled, wmat)

    return out_flat.reshape(B, C_OUT, H, W)


def ref_modulated_conv2d(x, style, params):
    """Pure-JAX f32 reference mirroring PyTorch ModulatedConv2d.forward (NCHW)."""
    s = style @ (params["mod_w"] * MOD_SCALE).T + params["mod_b"] * LR_MUL   # (B, C_IN)
    w = CONV_SCALE * params["conv_w"][None] * s[:, None, :, None, None]      # (B,C_OUT,C_IN,K,K)
    if DEMODULATE:
        demod = lax.rsqrt(jnp.sum(w * w, axis=(2, 3, 4)) + EPS)
        w = w * demod[:, :, None, None, None]
    wg = w.reshape(B * C_OUT, C_IN, K, K)
    xg = x.reshape(1, B * C_IN, H, W)
    out = lax.conv_general_dilated(
        xg, wg, window_strides=(1, 1),
        padding=[(K // 2, K // 2), (K // 2, K // 2)],
        dimension_numbers=("NCHW", "OIHW", "NCHW"),
        feature_group_count=B,
    ).reshape(B, C_OUT, H, W)
    return out


if __name__ == "__main__":
    key = jax.random.PRNGKey(0)
    k1, k2, k3, k4 = jax.random.split(key, 4)

    # deterministic synthetic parameters (shapes per module __init__; the leading 1 of
    # the (1, C_OUT, C_IN, K, K) weight is dropped in the param dict)
    params = {
        "conv_w": jax.random.normal(k1, (C_OUT, C_IN, K, K), jnp.float32),
        "mod_w": jax.random.normal(k2, (C_IN, STYLE_DIM), jnp.float32),
        "mod_b": jnp.ones((C_IN,), jnp.float32),                 # bias_init=1
    }

    x = jax.random.normal(k3, (B, C_IN, H, W), jnp.float32)
    style = jax.random.normal(k4, (B, STYLE_DIM), jnp.float32)

    out = jax.block_until_ready(jax.jit(modulated_conv2d)(x, style, params))
    ref = jax.block_until_ready(ref_modulated_conv2d(x, style, params))

    assert out.shape == (B, C_OUT, H, W), out.shape
    # bf16 MXU operands with f32 accumulation -> looser tolerance than the pure-f32 path.
    assert jnp.allclose(out, ref, atol=3e-2, rtol=3e-2), float(jnp.max(jnp.abs(out - ref)))
    print("KERNEL_OK")
</pallas_src>

<mosaic_0001>
module attributes {stable_mosaic.version = 11 : i64} {
  func.func @modconv_kernel(%arg0: i32, %arg1: memref<1x8x290xf32, #tpu.memory_space<vmem>>, %arg2: memref<1x1x72xf32, #tpu.memory_space<vmem>>, %arg3: memref<8x72xf32, #tpu.memory_space<vmem>>, %arg4: memref<1x8x256xf32, #tpu.memory_space<vmem>>) attributes {dimension_semantics = [#tpu.dimension_semantics<parallel>], iteration_bounds = array<i64: 2>, scalar_prefetch = 0 : i64, scratch_operands = 0 : i64, tpu.core_type = #tpu.core_type<tc>, window_params = [{transform_indices = @transform_0, window_bounds = array<i64: 1, 8, 290>}, {transform_indices = @transform_1, window_bounds = array<i64: 1, 1, 72>}, {pipeline_mode = #tpu.pipeline_mode<synchronous>, transform_indices = @transform_2, window_bounds = array<i64: 8, 72>}, {transform_indices = @transform_3, window_bounds = array<i64: 1, 8, 256>}]} {
    %c0 = arith.constant 0 : index
    %c0_0 = arith.constant 0 : index
    %0 = vector.load %arg3[%c0, %c0_0] : memref<8x72xf32, #tpu.memory_space<vmem>>, vector<8x72xf32>
    %c0_1 = arith.constant 0 : index
    %c0_2 = arith.constant 0 : index
    %c0_3 = arith.constant 0 : index
    %1 = vector.load %arg2[%c0_1, %c0_2, %c0_3] : memref<1x1x72xf32, #tpu.memory_space<vmem>>, vector<1x1x72xf32>
    %2 = vector.shape_cast %1 : vector<1x1x72xf32> to vector<1x72xf32>
    %3 = vector.broadcast %2 : vector<1x72xf32> to vector<8x72xf32>
    %4 = arith.mulf %0, %3 : vector<8x72xf32>
    %5 = arith.mulf %4, %4 : vector<8x72xf32>
    %cst = arith.constant dense<0.000000e+00> : vector<8xf32>
    %6 = vector.multi_reduction <add>, %5, %cst [1] : vector<8x72xf32> to vector<8xf32>
    %7 = vector.shape_cast %6 : vector<8xf32> to vector<8x1xf32>
    %cst_4 = arith.constant 9.99999993E-9 : f32
    %8 = vector.broadcast %cst_4 : f32 to vector<8x1xf32>
    %9 = arith.addf %7, %8 : vector<8x1xf32>
    %10 = math.rsqrt %9 : vector<8x1xf32>
    %11 = vector.broadcast %10 : vector<8x1xf32> to vector<8x72xf32>
    %12 = arith.mulf %4, %11 : vector<8x72xf32>
    %13 = arith.truncf %12 : vector<8x72xf32> to vector<8x72xbf16>
    %14 = tpu.iota {dimensions = array<i32: 1>} : vector<1x256xi32>
    %c16_i32 = arith.constant 16 : i32
    %c0_i32 = arith.constant 0 : i32
    %15 = arith.cmpi eq, %c16_i32, %c0_i32 : i32
    %c1_i32 = arith.constant 1 : i32
    %16 = arith.select %15, %c1_i32, %c16_i32 : i32
    %17 = vector.broadcast %16 : i32 to vector<1x256xi32>
    %18 = arith.remsi %14, %17 : vector<1x256xi32>
    %c0_i32_5 = arith.constant 0 : i32
    %19 = vector.broadcast %c0_i32_5 : i32 to vector<1x256xi32>
    %20 = arith.cmpi ne, %18, %19 : vector<1x256xi32>
    %c0_i32_6 = arith.constant 0 : i32
    %21 = vector.broadcast %c0_i32_6 : i32 to vector<1x256xi32>
    %22 = arith.cmpi slt, %18, %21 : vector<1x256xi32>
    %c0_i32_7 = arith.constant 0 : i32
    %23 = arith.cmpi slt, %16, %c0_i32_7 : i32
    %24 = vector.broadcast %23 : i1 to vector<1x256xi1>
    %25 = vector.broadcast %24 : vector<1x256xi1> to vector<1x256xi1>
    %26 = arith.xori %22, %25 : vector<1x256xi1>
    %27 = arith.andi %26, %20 : vector<1x256xi1>
    %28 = vector.broadcast %16 : i32 to vector<1x256xi32>
    %29 = arith.addi %18, %28 : vector<1x256xi32>
    %30 = arith.select %27, %29, %18 : vector<1x256xi1>, vector<1x256xi32>
    %c0_8 = arith.constant 0 : index
    %c0_9 = arith.constant 0 : index
    %c0_10 = arith.constant 0 : index
    %31 = vector.load %arg1[%c0_8, %c0_9, %c0_10] : memref<1x8x290xf32, #tpu.memory_space<vmem>>, vector<1x8x256xf32>
    %32 = vector.shape_cast %31 : vector<1x8x256xf32> to vector<8x256xf32>
    %c1_i32_11 = arith.constant 1 : i32
    %33 = vector.broadcast %c1_i32_11 : i32 to vector<1x256xi32>
    %34 = arith.cmpi sge, %30, %33 : vector<1x256xi32>
    %cst_12 = arith.constant 0.000000e+00 : f32
    %35 = vector.shape_cast %34 : vector<1x256xi1> to vector<1x256xi1>
    %36 = vector.broadcast %35 : vector<1x256xi1> to vector<8x256xi1>
    %37 = vector.broadcast %cst_12 : f32 to vector<8x256xf32>
    %38 = arith.select %36, %32, %37 : vector<8x256xi1>, vector<8x256xf32>
    %c0_13 = arith.constant 0 : index
    %c0_14 = arith.constant 0 : index
    %c1 = arith.constant 1 : index
    %39 = vector.load %arg1[%c0_13, %c0_14, %c1] : memref<1x8x290xf32, #tpu.memory_space<vmem>>, vector<1x8x256xf32>
    %40 = vector.shape_cast %39 : vector<1x8x256xf32> to vector<8x256xf32>
    %c0_15 = arith.constant 0 : index
    %c0_16 = arith.constant 0 : index
    %c2 = arith.constant 2 : index
    %41 = vector.load %arg1[%c0_15, %c0_16, %c2] : memref<1x8x290xf32, #tpu.memory_space<vmem>>, vector<1x8x256xf32>
    %42 = vector.shape_cast %41 : vector<1x8x256xf32> to vector<8x256xf32>
    %c15_i32 = arith.constant 15 : i32
    %43 = vector.broadcast %c15_i32 : i32 to vector<1x256xi32>
    %44 = arith.cmpi slt, %30, %43 : vector<1x256xi32>
    %cst_17 = arith.constant 0.000000e+00 : f32
    %45 = vector.shape_cast %44 : vector<1x256xi1> to vector<1x256xi1>
    %46 = vector.broadcast %45 : vector<1x256xi1> to vector<8x256xi1>
    %47 = vector.broadcast %cst_17 : f32 to vector<8x256xf32>
    %48 = arith.select %46, %42, %47 : vector<8x256xi1>, vector<8x256xf32>
    %c0_18 = arith.constant 0 : index
    %c0_19 = arith.constant 0 : index
    %c16 = arith.constant 16 : index
    %49 = vector.load %arg1[%c0_18, %c0_19, %c16] : memref<1x8x290xf32, #tpu.memory_space<vmem>>, vector<1x8x256xf32>
    %50 = vector.shape_cast %49 : vector<1x8x256xf32> to vector<8x256xf32>
    %c1_i32_20 = arith.constant 1 : i32
    %51 = vector.broadcast %c1_i32_20 : i32 to vector<1x256xi32>
    %52 = arith.cmpi sge, %30, %51 : vector<1x256xi32>
    %cst_21 = arith.constant 0.000000e+00 : f32
    %53 = vector.shape_cast %52 : vector<1x256xi1> to vector<1x256xi1>
    %54 = vector.broadcast %53 : vector<1x256xi1> to vector<8x256xi1>
    %55 = vector.broadcast %cst_21 : f32 to vector<8x256xf32>
    %56 = arith.select %54, %50, %55 : vector<8x256xi1>, vector<8x256xf32>
    %c0_22 = arith.constant 0 : index
    %c0_23 = arith.constant 0 : index
    %c17 = arith.constant 17 : index
    %57 = vector.load %arg1[%c0_22, %c0_23, %c17] : memref<1x8x290xf32, #tpu.memory_space<vmem>>, vector<1x8x256xf32>
    %58 = vector.shape_cast %57 : vector<1x8x256xf32> to vector<8x256xf32>
    %c0_24 = arith.constant 0 : index
    %c0_25 = arith.constant 0 : index
    %c18 = arith.constant 18 : index
    %59 = vector.load %arg1[%c0_24, %c0_25, %c18] : memref<1x8x290xf32, #tpu.memory_space<vmem>>, vector<1x8x256xf32>
    %60 = vector.shape_cast %59 : vector<1x8x256xf32> to vector<8x256xf32>
    %c15_i32_26 = arith.constant 15 : i32
    %61 = vector.broadcast %c15_i32_26 : i32 to vector<1x256xi32>
    %62 = arith.cmpi slt, %30, %61 : vector<1x256xi32>
    %cst_27 = arith.constant 0.000000e+00 : f32
    %63 = vector.shape_cast %62 : vector<1x256xi1> to vector<1x256xi1>
    %64 = vector.broadcast %63 : vector<1x256xi1> to vector<8x256xi1>
    %65 = vector.broadcast %cst_27 : f32 to vector<8x256xf32>
    %66 = arith.select %64, %60, %65 : vector<8x256xi1>, vector<8x256xf32>
    %c0_28 = arith.constant 0 : index
    %c0_29 = arith.constant 0 : index
    %c32 = arith.constant 32 : index
    %67 = vector.load %arg1[%c0_28, %c0_29, %c32] : memref<1x8x290xf32, #tpu.memory_space<vmem>>, vector<1x8x256xf32>
    %68 = vector.shape_cast %67 : vector<1x8x256xf32> to vector<8x256xf32>
    %c1_i32_30 = arith.constant 1 : i32
    %69 = vector.broadcast %c1_i32_30 : i32 to vector<1x256xi32>
    %70 = arith.cmpi sge, %30, %69 : vector<1x256xi32>
    %cst_31 = arith.constant 0.000000e+00 : f32
    %71 = vector.shape_cast %70 : vector<1x256xi1> to vector<1x256xi1>
    %72 = vector.broadcast %71 : vector<1x256xi1> to vector<8x256xi1>
    %73 = vector.broadcast %cst_31 : f32 to vector<8x256xf32>
    %74 = arith.select %72, %68, %73 : vector<8x256xi1>, vector<8x256xf32>
    %c0_32 = arith.constant 0 : index
    %c0_33 = arith.constant 0 : index
    %c33 = arith.constant 33 : index
    %75 = vector.load %arg1[%c0_32, %c0_33, %c33] : memref<1x8x290xf32, #tpu.memory_space<vmem>>, vector<1x8x256xf32>
    %76 = vector.shape_cast %75 : vector<1x8x256xf32> to vector<8x256xf32>
    %c0_34 = arith.constant 0 : index
    %c0_35 = arith.constant 0 : index
    %c34 = arith.constant 34 : index
    %77 = vector.load %arg1[%c0_34, %c0_35, %c34] : memref<1x8x290xf32, #tpu.memory_space<vmem>>, vector<1x8x256xf32>
    %78 = vector.shape_cast %77 : vector<1x8x256xf32> to vector<8x256xf32>
    %c15_i32_36 = arith.constant 15 : i32
    %79 = vector.broadcast %c15_i32_36 : i32 to vector<1x256xi32>
    %80 = arith.cmpi slt, %30, %79 : vector<1x256xi32>
    %cst_37 = arith.constant 0.000000e+00 : f32
    %81 = vector.shape_cast %80 : vector<1x256xi1> to vector<1x256xi1>
    %82 = vector.broadcast %81 : vector<1x256xi1> to vector<8x256xi1>
    %83 = vector.broadcast %cst_37 : f32 to vector<8x256xf32>
    %84 = arith.select %82, %78, %83 : vector<8x256xi1>, vector<8x256xf32>
    %85 = tpu.concatenate %38, %40, %48, %56, %58, %66, %74, %76, %84 in 0 : vector<8x256xf32>, vector<8x256xf32>, vector<8x256xf32>, vector<8x256xf32>, vector<8x256xf32>, vector<8x256xf32>, vector<8x256xf32>, vector<8x256xf32>, vector<8x256xf32> -> vector<72x256xf32>
    %86 = arith.truncf %85 : vector<72x256xf32> to vector<72x256xbf16>
    %cst_38 = arith.constant dense<0.000000e+00> : vector<8x256xf32>
    %87 = tpu.matmul %13, %86, %cst_38 {dimension_numbers = #tpu.dot_dimension_numbers<[1], [0], [0], [1], [0, 0, 1, 1], [], []>} : vector<8x72xbf16>, vector<72x256xbf16>, vector<8x256xf32> -> vector<8x256xf32>
    %c0_39 = arith.constant 0 : index
    %c0_40 = arith.constant 0 : index
    %c0_41 = arith.constant 0 : index
    %88 = vector.load %arg4[%c0_39, %c0_40, %c0_41] : memref<1x8x256xf32, #tpu.memory_space<vmem>>, vector<1x8x256xf32>
    %89 = vector.shape_cast %88 : vector<1x8x256xf32> to vector<8x256xf32>
    %90 = vector.shape_cast %87 : vector<8x256xf32> to vector<1x8x256xf32>
    tpu.vector_store %arg4[%c0_39, %c0_40, %c0_41], %90 {strides = array<i32>} : memref<1x8x256xf32, #tpu.memory_space<vmem>>, vector<1x8x256xf32>,
    return
  }
  func.func @transform_0(%arg0: i32) -> (i32, i32, i32) {
    %c0_i32 = arith.constant 0 : i32
    %c0_i32_0 = arith.constant 0 : i32
    %c0_i32_1 = arith.constant 0 : i32
    return %arg0, %c0_i32, %c0_i32_0 : i32, i32, i32
  }
  func.func @transform_1(%arg0: i32) -> (i32, i32, i32) {
    %c0_i32 = arith.constant 0 : i32
    %c0_i32_0 = arith.constant 0 : i32
    %c0_i32_1 = arith.constant 0 : i32
    return %arg0, %c0_i32, %c0_i32_0 : i32, i32, i32
  }
  func.func @transform_2(%arg0: i32) -> (i32, i32) {
    %c0_i32 = arith.constant 0 : i32
    %c0_i32_0 = arith.constant 0 : i32
    %c0_i32_1 = arith.constant 0 : i32
    return %c0_i32, %c0_i32_0 : i32, i32
  }
  func.func @transform_3(%arg0: i32) -> (i32, i32, i32) {
    %c0_i32 = arith.constant 0 : i32
    %c0_i32_0 = arith.constant 0 : i32
    %c0_i32_1 = arith.constant 0 : i32
    return %arg0, %c0_i32, %c0_i32_0 : i32, i32, i32
  }
}

</mosaic_0001>

<bundles_post_ra>
// kernel: modulated_conv2d.1
= control target key start
LH: loop header
LB: loop body
LE: loop exit
PB: predicated region body
PF: predicated region fallthrough
CT: control target
= control target key end

     0   :  { %s613_s12 = smov 0   ;;  %s732_s0 = inlined_call_operand.vmem [shape: f32[2,8,290], index: 0, kind: input, shape index: {}]   ;;  %s733_s1 = inlined_call_operand.vmem [shape: f32[2,1,72], index: 1, kind: input, shape index: {}]   ;;  %s734_s2 = inlined_call_operand.vmem [shape: f32[8,72], index: 2, kind: input, shape index: {}]   ;;  %s735_s3 = inlined_call_operand.vmem [shape: f32[2,8,256], index: 3, kind: output, shape index: {}]  }
   0x1 LB: > { %s476_s13 = sadd.s32 4294967295, %s581_s12   ;;  %p480_p0 = scmp.ge.s32.totalorder %s581_s12, 1  ;;  %s581_s12 = sphi %s613_s12, %s13_s12  }
   0x2   : > { %p145_p1 = scmp.lt.s32.totalorder %s581_s12, 3 }
   0x4   : > { %p146_p2 = pnand %p480_p0, %p145_p1 }
   0x5   : > { %p172_p3 = scmp.lt.s32.totalorder (!%p146_p2), %s476_s13, 1  ;;  %v186_v0 = vld [vmem:[%s734_s2] sm:$0xff] (!%p146_p2)  ;;  %vm196_vm0 = vcmask (!%p146_p2), 588800   ;;  %s583_s23 = smov (!%p146_p2), 127   ;;  %v591_v10 = vmov (!%p146_p2), 0   ;;  %v204_v16 = vlaneseq (!%p146_p2)  ;;  %vm257_vm1 = vcmask (!%p146_p2), 1031168  }
   0x6   : > { %149 = sbr.rel (%p146_p2) target bundleno = 408 (0x198), region = 32  ;;  %s584_s24 = smov (!%p146_p2), 126   ;;  %401 = vmatprep.mubr.bf16.mxu0 (!%p146_p2), %v591_v10  ;;  %vm270_vm2 = vcmask (!%p146_p2), 916480   ;;  %vm283_vm3 = vcmask (!%p146_p2), 900096   ;;  %vm322_vm5 = vcmask (!%p146_p2), 1039360   ;;  %vm592_vm8 = vmmov (!%p146_p2), 1  }
   0x7   : > { %s585_s25 = smov (!%p146_p2), 112   ;;  %s586_s26 = smov (!%p146_p2), 110   ;;  %v205_v18 = vand.u32 (!%p146_p2), 127, %v204_v16  ;;  %vm333_vm10 = vcmask (!%p146_p2), 908288   ;;  %vm296_vm15 = vcmask (!%p146_p2), 785408  }
   0x8   : > { %s587_s27 = smov (!%p146_p2), 111   ;;  %s588_s28 = smov (!%p146_p2), 95  }
   0x9   : > { %s589_s29 = smov (!%p146_p2), 96   ;;  %s590_s30 = smov (!%p146_p2), 94   ;;  %v206_v19 = vadd.s32 (!%p146_p2), 128, %v205_v18  ;;  %v211_v23 = vand.u32 (!%p146_p2), 15, %v205_v18 }
   0xb   : > { %v218_v22 = vand.u32 (!%p146_p2), 15, %v206_v19  ;;  %vm661_vm7 = vcmp.ge.s32.totalorder (!%p146_p2), %v211_v23, 1  ;;  %vm687_vm13 = vcmp.lt.s32.totalorder (!%p146_p2), %v211_v23, 15 }
   0xc   : > { %vm678_vm11 = vmpackc.low (!%p146_p2), %vm592_vm8, %vm661_vm7 }
   0xd   : > { %s749_s13 = smov (!%p172_p3, %s476_s13), 1  ;;  %vm653_vm4 = vcmp.ge.s32.totalorder %v218_v22, 1  ;;  %vm657_vm6 = vcmp.lt.s32.totalorder %v218_v22, 15  ;;  %vm494_vm14 = vmpackc.low %vm661_vm7, %vm687_vm13 }
   0xe   : > { %s514_s16 = smul.u32 24, %s749_s13  ;;  %s179_s19 = scalar_lea.vmem %s733_s1, %s749_s13  ;;  %vm670_vm9 = vmpackc.low %vm592_vm8, %vm653_vm4 }
   0xf   : > { %v484_v1 = vld [vmem:[%s179_s19] ss:$0 sm:$0xff]  ;;  %vm491_vm12 = vmpackc.low %vm653_vm4, %vm657_vm6  ;;  %s513_s4 = sshll.u32 %s749_s13, 4 }
  0x10   : > { %s176_s22 = scalar_lea.vmem %s732_s0, %s514_s16  ;;  %v634_v2 = vmul.f32 %v484_v1, %v186_v0  ;;  %vm500_vm4 = vmpackc.low %vm687_vm13, %vm592_vm8  ;;  %s184_s7 = scalar_lea.vmem %s735_s3, %s513_s4 }
  0x11   : > { %v636_v3 = vld [vmem:[%s176_s22] sm:$0xff]  ;;  %v638_v4 = vld [vmem:[%s176_s22 + $0x8] sm:$0xff]  ;;  %v241_v5 = vld [vmem:[%s176_s22 + $0x10] sm:$0xff] }
  0x12   : > { %316 = vrot.lane.b32.xlu1 %v636_v3, %s583_s23  ;;  %v195_v6 = vmul.f32 %v634_v2, %v634_v2  ;;  %v538_v7 = vpack.i.bf16 %v241_v5, %v638_v4  ;;  %v568_v9 = vpack.i.bf16 %v638_v4, %v636_v3 }
  0x14   : > { %v197_v8 = vsel %vm196_vm0, %v195_v6, 0.0 }
  0x15   : > { %198 = vadd.xlane.f32.xlu0 %v197_v8 }
  0x16   : > { %539 = vrot.lane.b32.xlu1 %v538_v7, %s584_s24 }
  0x1a   : > { %544 = vrot.lane.b32.xlu1 %v538_v7, %s585_s25 }
  0x1e   : > { %251 = vrot.lane.b32.xlu1 %v636_v3, %s584_s24 }
  0x22   : > { %264 = vrot.lane.b32.xlu1 %v636_v3, %s585_s25 }
  0x26   : > { %549 = vrot.lane.b32.xlu1 %v538_v7, %s586_s26 }
  0x2a   : > { %554 = vrot.lane.b32.xlu1 %v538_v7, %s587_s27 }
  0x2b   : > { %534 = vrot.lane.b32.xlu0 %v538_v7, %s583_s23 }
  0x2e   : > { %327 = vrot.lane.b32.xlu1 %v636_v3, %s587_s27 }
  0x2f   : > { %277 = vrot.lane.b32.xlu0 %v636_v3, %s586_s26 }
  0x32   : > { %564 = vrot.lane.b32.xlu1 %v538_v7, %s588_s28 }
  0x33   : > { %559 = vrot.lane.b32.xlu0 %v538_v7, %s589_s29 }
  0x36   : > { %338 = vrot.lane.b32.xlu1 %v636_v3, %s588_s28 }
  0x37   : > { %290 = vrot.lane.b32.xlu0 %v636_v3, %s589_s29 }
  0x3a   : > { %307 = vrot.lane.b32.xlu1 %v241_v5, %s590_s30 }
  0x3b   : > { %569 = vrot.lane.b32.xlu0 %v568_v9, %s590_s30 }
  0x84   : > { %v317_v11 = vpop.permute.xlu1 %316 }
  0x88   : > { %v540_v12 = vpop.permute.xlu1 %539 }
  0x89   : > { %v542_v24 = vunpack.i.h.bf16 %v540_v12  ;;  %v541_v25 = vunpack.i.l.bf16 %v540_v12 }
  0x8b   : > { %v259_v35 = vsel %vm257_vm1, %v541_v25, %v542_v24 }
  0x8c   : > { %v545_v13 = vpop.permute.xlu1 %544 }
  0x8d   : > { %v547_v26 = vunpack.i.h.bf16 %v545_v13  ;;  %v546_v27 = vunpack.i.l.bf16 %v545_v13 }
  0x8f   : > { %v272_v36 = vsel %vm270_vm2, %v546_v27, %v547_v26 }
  0x90   : > { %v252_v14 = vpop.permute.xlu1 %251  ;;  %v492_v53 = vpack.c.bf16 %v272_v36, %v259_v35 }
  0x91   : > { %v258_v51 = vsel %vm257_vm1, %v252_v14, %v541_v25  ;;  %vm344_vm1 = vcmask 777216  }
  0x94   : > { %v265_v15 = vpop.permute.xlu1 %264 }
  0x95   : > { %v271_v52 = vsel %vm270_vm2, %v265_v15, %v546_v27  ;;  %vm497_vm2 = vmpackc.low %vm657_vm6, %vm592_vm8 }
  0x96   : > { %v495_v59 = vpack.c.bf16 %v271_v52, %v258_v51 }
  0x98   : > { %v550_v17 = vpop.permute.xlu1 %549 }
  0x99   : > { %v552_v37 = vunpack.i.h.bf16 %v550_v17  ;;  %v551_v38 = vunpack.i.l.bf16 %v550_v17 }
  0x9b   : > { %v285_v54 = vsel %vm283_vm3, %v551_v38, %v552_v37 }
  0x9c   : > { %v555_v20 = vpop.permute.xlu1 %554 }
  0x9d   : > { %v557_v39 = vunpack.i.h.bf16 %v555_v20  ;;  %v556_v40 = vunpack.i.l.bf16 %v555_v20 }
  0x9f   : > { %v335_v55 = vsel %vm333_vm10, %v556_v40, %v557_v39 }
  0xa0   : > { %v328_v28 = vpop.permute.xlu1 %327  ;;  %v498_v0 = vpack.c.bf16 %v285_v54, %v335_v55 }
  0xa1   : > { %v334_v63 = vsel %vm333_vm10, %v328_v28, %v556_v40 }
  0xa2   : > { %v199_v21 = vpop.xlane.xlu0 %198 }
  0xa3   : > { %v200_v44 = vadd.f32 1e-08, %v199_v21 }
  0xa4   : > { %v565_v49 = vpop.permute.xlu1 %564 }
  0xa5   : > { %v567_v56 = vunpack.i.h.bf16 %v565_v49  ;;  %v566_v57 = vunpack.i.l.bf16 %v565_v49  ;;  %573 = vrsqrt.f32 %v200_v44 }
  0xa6   : > { %v535_v29 = vpop.permute.xlu0 %534 }
  0xa7   : > { %v537_v31 = vunpack.i.h.bf16 %v535_v29  ;;  %v536_v32 = vunpack.i.l.bf16 %v535_v29 }
  0xa9   : > { %v324_v41 = vsel %vm322_vm5, %v536_v32, %v537_v31  ;;  %v323_v43 = vsel %vm322_vm5, %v317_v11, %v536_v32  ;;  %vm362_vm5 = vcmask 1043456  }
  0xaa   : > { %v278_v45 = vpop.permute.xlu0 %277  ;;  %v486_v46 = vpack.c.bf16 %v324_v41, %v638_v4  ;;  %v489_v48 = vpack.c.bf16 %v323_v43, %v636_v3  ;;  %v339_v3 = vpop.permute.xlu1 %338  ;;  %v346_v4 = vsel %vm344_vm1, %v566_v57, %v567_v56 }
  0xab   : > { %v284_v62 = vsel %vm283_vm3, %v278_v45, %v551_v38  ;;  %v345_v8 = vsel %vm344_vm1, %v339_v3, %v566_v57  ;;  %vm309_vm3 = vcmask 769024  }
  0xac   : > { %487 = vmatprep.subr.msk.bf16.mxu0 %vm670_vm9, %v486_v46  ;;  %v501_v6 = vpack.c.bf16 %v284_v62, %v334_v63 }
  0xad   : > { %490 = vmatpush1.bf16.msk.msra.mxu0 %vm678_vm11, %v489_v48 }
  0xae   : > { %v560_v58 = vpop.permute.xlu0 %559  ;;  %493 = vmatprep.subr.msk.bf16.mxu0 %vm491_vm12, %v492_v53  ;;  %v308_v11 = vpop.permute.xlu1 %307 }
  0xaf   : > { %v562_v60 = vunpack.i.h.bf16 %v560_v58  ;;  %v561_v61 = vunpack.i.l.bf16 %v560_v58  ;;  %v574_v15 = vpop.eup %573 }
  0xb0   : > { %v202_v22 = vmul.f32 %v574_v15, %v634_v2 }
  0xb1   : > { %496 = vmatpush1.bf16.msk.msra.mxu0 %vm494_vm14, %v495_v59  ;;  %v298_v1 = vsel %vm296_vm15, %v561_v61, %v562_v60 }
  0xb2   : > { %v291_v5 = vpop.permute.xlu0 %290  ;;  %499 = vmatprep.subr.msk.bf16.mxu0 %vm497_vm2, %v498_v0  ;;  %v504_v9 = vpack.c.bf16 %v346_v4, %v298_v1  ;;  %v203_v24 = vpack.c.bf16 %v202_v22, %v202_v22 }
  0xb3   : > { %v297_v7 = vsel %vm296_vm15, %v291_v5, %v561_v61 }
  0xb4   : > { %v507_v12 = vpack.c.bf16 %v345_v8, %v297_v7 }
  0xb5   : > { %502 = vmatpush1.bf16.msk.msra.mxu0 %vm500_vm4, %v501_v6 }
  0xb6   : > { %v570_v10 = vpop.permute.xlu0 %569  ;;  %505 = vmatprep.subr.msk.bf16.mxu0 %vm670_vm9, %v504_v9 }
  0xb7   : > { %v572_v13 = vunpack.i.h.bf16 %v570_v10  ;;  %v571_v14 = vunpack.i.l.bf16 %v570_v10 }
  0xb9   : > { %v311_v16 = vsel %vm309_vm3, %v572_v13, %v308_v11  ;;  %508 = vmatpush1.bf16.msk.msra.mxu0 %vm678_vm11, %v507_v12  ;;  %v310_v17 = vsel %vm309_vm3, %v571_v14, %v572_v13 }
  0xba   : > { %v315_v18 = vsel %vm657_vm6, %v311_v16, 0.0  ;;  %v314_v19 = vsel %vm687_vm13, %v310_v17, 0.0 }
  0xbb   : > { %v358_v20 = vpack.c.bf16 %v315_v18, %v315_v18  ;;  %v357_v21 = vpack.c.bf16 %v314_v19, %v314_v19 }
  0xbd   : > { %509 = vmatprep.subr.msk.bf16.mxu0 %vm362_vm5, %v358_v20  ;;  %v364_v23 = vsel %vm362_vm5, %v357_v21, 0 }
  0xbe   : > { %378 = vmatpush1.bf16.msra.mxu0 %v364_v23 }
  0xc1   : > { %510 = vmatmul.mubr.msk.bf16.vlgmr.msra.gmra.mrb[0].mxu0 %vm196_vm0, %v203_v24 }
 0x194   : > { %v403_v25 = vpop.f32.mrb[0].mxu0 }
 0x195   : > { %410 = vst [vmem:[%s184_s7] sm:$0xff] %v403_v25  ;;  %v405_v26 = vpop.f32.mrb[1].mxu0 }
 0x196   : > { %411 = vst [vmem:[%s184_s7 + $0x8] sm:$0xff] %v405_v26  ;;  %v407_v27 = vpop.f32.mrb[2].mxu0 }
 0x197   : > { %v408_v28 = vpop.f32.mrb[3].mxu0 }
 0x198 PF: > { %s13_s12 = sadd.s32 1, %s581_s12  }
 0x199   : > { %p10_p4 = scmp.ge.s32.totalorder %s13_s12, 4  }
 0x19b   :  { %12 = sbr.rel (!%p10_p4) target bundleno = 1 (0x1), region = 65 }

</bundles_post_ra>
